<compile_context>
chip_gen: v5e
topology: v5e:2x2
jax: 0.10.0
libtpu: 0.0.40
codegen_flags: <defaults>
</compile_context>

<pallas_src>
import jax
import jax.numpy as jnp
from jax.experimental import pallas as pl
from jax.experimental.pallas import tpu as pltpu

_BN_EPS = 1e-5
_LANE = 128


def _round_up(d, m=_LANE):
    return ((d + m - 1) // m) * m


def _make_kernel(mid_p, out_p):
    """Build the kernel with static (padded) feature widths baked in."""

    def kernel(x_ref, w1_ref, w2_ref, w3_ref, w4_ref, vec_ref, o_ref):
        x = x_ref[...]
        vecs = vec_ref[...]
        # Packed (8, vec_w) tile: rows = g1, be1, g2, be2, g3, be3, b4, zeros.
        g1, be1 = vecs[0:1, :mid_p], vecs[1:2, :mid_p]
        g2, be2 = vecs[2:3, :mid_p], vecs[3:4, :mid_p]
        g3, be3 = vecs[4:5, :mid_p], vecs[5:6, :mid_p]
        b4 = vecs[6:7, :out_p]

        def bn_tanh(h, gamma, beta):
            # One-pass training-mode BatchNorm1d fused with affine + tanh.
            m = jnp.mean(h, axis=0, keepdims=True)
            msq = jnp.mean(h * h, axis=0, keepdims=True)
            var = jnp.maximum(msq - m * m, 0.0)           # biased variance
            scale = gamma * jax.lax.rsqrt(var + _BN_EPS)  # EUP rsqrt
            shift = beta - m * scale
            # Padded feature lanes have gamma == 0 -> scale = shift = 0 ->
            # tanh(0) = 0, so padding stays exactly zero through every layer.
            return jnp.tanh(h * scale + shift)            # EUP tanh

        # linear1 (bias folded away by BN) -> bn1 -> tanh
        x1 = jnp.dot(x, w1_ref[...], preferred_element_type=jnp.float32)
        h = bn_tanh(x1, g1, be1)
        # linear2 -> bn2 -> tanh
        h = jnp.dot(h, w2_ref[...], preferred_element_type=jnp.float32)
        h = bn_tanh(h, g2, be2)
        # linear3 -> residual mix with x1 -> bn3 -> tanh
        h = jnp.dot(h, w3_ref[...], preferred_element_type=jnp.float32)
        h = bn_tanh((h + x1) * 0.5, g3, be3)
        # linear4 (+ bias, kept: no BN after it)
        o_ref[...] = (
            jnp.dot(h, w4_ref[...], preferred_element_type=jnp.float32) + b4
        )

    return kernel


def pack_params(p, in_dim, mid_dim, out_dim):
    """One-time prep: transpose Linear weights to (in, out), zero-pad all feature
    dims to multiples of 128, and pack the small vectors into one (8, 128) tile."""
    in_p, mid_p, out_p = _round_up(in_dim), _round_up(mid_dim), _round_up(out_dim)
    vec_w = max(mid_p, out_p)

    def pad_wT(w, rows, cols):
        wt = w.T.astype(jnp.float32)  # nn.Linear weight is (out, in) -> (in, out)
        return jnp.zeros((rows, cols), jnp.float32).at[: wt.shape[0], : wt.shape[1]].set(wt)

    def pad_vec(v, width):
        return jnp.zeros((width,), jnp.float32).at[: v.shape[0]].set(v.astype(jnp.float32))

    vecs = jnp.stack(
        [
            pad_vec(p["g1"], vec_w), pad_vec(p["beta1"], vec_w),
            pad_vec(p["g2"], vec_w), pad_vec(p["beta2"], vec_w),
            pad_vec(p["g3"], vec_w), pad_vec(p["beta3"], vec_w),
            pad_vec(p["b4"], vec_w), jnp.zeros((vec_w,), jnp.float32),
        ]
    )
    return {
        "w1": pad_wT(p["w1"], in_p, mid_p),
        "w2": pad_wT(p["w2"], mid_p, mid_p),
        "w3": pad_wT(p["w3"], mid_p, mid_p),
        "w4": pad_wT(p["w4"], mid_p, out_p),
        "vecs": vecs,
        "dims": (in_dim, mid_dim, out_dim, in_p, mid_p, out_p),
    }


def projection_head(x, packed):
    """x: (N, in_dim) f32.  packed: output of pack_params."""
    in_dim, _, out_dim, in_p, mid_p, out_p = packed["dims"]
    n = x.shape[0]

    # Lane-pad the input feature dim (zero columns contribute nothing: the
    # matching weight rows are zero-padded too).
    xp = x if in_dim == in_p else jnp.pad(x, ((0, 0), (0, in_p - in_dim)))

    vmem = pl.BlockSpec(memory_space=pltpu.MemorySpace.VMEM)
    out_padded = pl.pallas_call(
        _make_kernel(mid_p, out_p),
        out_shape=jax.ShapeDtypeStruct((n, out_p), jnp.float32),
        in_specs=[vmem] * 6,
        out_specs=vmem,
        # Explicit scoped-VMEM budget (safe on v5e/v6e/v7x at these sizes);
        # re-derive when scaling N (v7x has only 64 MiB physical VMEM per TC).
        compiler_params=pltpu.CompilerParams(vmem_limit_bytes=32 * 1024 * 1024),
    )(xp, packed["w1"], packed["w2"], packed["w3"], packed["w4"], packed["vecs"])

    return out_padded[:, :out_dim]


def init_params(key, in_dim, mid_dim, out_dim):
    """Deterministic synthetic parameters matching the PyTorch module's shapes."""
    ks = jax.random.split(key, 8)
    p = {}
    # nn.Linear weights are (out_features, in_features)
    p["w1"] = jax.random.normal(ks[0], (mid_dim, in_dim), jnp.float32) * 0.1
    p["b1"] = jax.random.normal(ks[1], (mid_dim,), jnp.float32) * 0.1
    p["w2"] = jax.random.normal(ks[2], (mid_dim, mid_dim), jnp.float32) * 0.1
    p["b2"] = jax.random.normal(ks[3], (mid_dim,), jnp.float32) * 0.1
    p["w3"] = jax.random.normal(ks[4], (mid_dim, mid_dim), jnp.float32) * 0.1
    p["b3"] = jax.random.normal(ks[5], (mid_dim,), jnp.float32) * 0.1
    p["w4"] = jax.random.normal(ks[6], (out_dim, mid_dim), jnp.float32) * 0.1
    p["b4"] = jax.random.normal(ks[7], (out_dim,), jnp.float32) * 0.1
    # BatchNorm1d affine params (PyTorch init: weight=1, bias=0)
    for i, d in ((1, mid_dim), (2, mid_dim), (3, mid_dim)):
        p[f"g{i}"] = jnp.ones((d,), jnp.float32)
        p[f"beta{i}"] = jnp.zeros((d,), jnp.float32)
    return p


def _reference(x, p):
    """Pure-JAX reference mirroring the PyTorch forward (training-mode BN),
    biases included (they cancel analytically inside BN)."""

    def bn(h, g, b):
        m = jnp.mean(h, axis=0, keepdims=True)
        v = jnp.mean((h - m) ** 2, axis=0, keepdims=True)
        return (h - m) / jnp.sqrt(v + _BN_EPS) * g + b

    x1 = x @ p["w1"].T + p["b1"]
    h = jnp.tanh(bn(x1, p["g1"], p["beta1"]))
    h = h @ p["w2"].T + p["b2"]
    h = jnp.tanh(bn(h, p["g2"], p["beta2"]))
    h = h @ p["w3"].T + p["b3"]
    h = jnp.tanh(bn((h + x1) / 2, p["g3"], p["beta3"]))
    return h @ p["w4"].T + p["b4"]


if __name__ == "__main__":
    key = jax.random.PRNGKey(0)
    k_x, k_p = jax.random.split(key)

    # Small but sublane/MXU-friendly batch (multiple of 8; fills 128 MXU rows).
    N, IN_DIM, MID_DIM, OUT_DIM = 128, 32, 64, 16
    x = jax.random.normal(k_x, (N, IN_DIM), jnp.float32)
    params = init_params(k_p, IN_DIM, MID_DIM, OUT_DIM)
    packed = pack_params(params, IN_DIM, MID_DIM, OUT_DIM)  # one-time prep

    out = projection_head(x, packed)
    out = jax.block_until_ready(out)

    ref = _reference(x, params)
    assert out.shape == (N, OUT_DIM)
    assert jnp.allclose(out, ref, atol=1e-3, rtol=1e-3), float(
        jnp.max(jnp.abs(out - ref))
    )

    print("KERNEL_OK")
</pallas_src>

<mosaic_0001>
module attributes {stable_mosaic.version = 11 : i64} {
  func.func @kernel(%arg0: memref<128x128xf32, #tpu.memory_space<vmem>>, %arg1: memref<128x128xf32, #tpu.memory_space<vmem>>, %arg2: memref<128x128xf32, #tpu.memory_space<vmem>>, %arg3: memref<128x128xf32, #tpu.memory_space<vmem>>, %arg4: memref<128x128xf32, #tpu.memory_space<vmem>>, %arg5: memref<8x128xf32, #tpu.memory_space<vmem>>, %arg6: memref<128x128xf32, #tpu.memory_space<vmem>>) attributes {dimension_semantics = [], scalar_prefetch = 0 : i64, scratch_operands = 0 : i64, tpu.core_type = #tpu.core_type<tc>} {
    %c0 = arith.constant 0 : index
    %c0_0 = arith.constant 0 : index
    %0 = vector.load %arg0[%c0, %c0_0] : memref<128x128xf32, #tpu.memory_space<vmem>>, vector<128x128xf32>
    %c0_1 = arith.constant 0 : index
    %c0_2 = arith.constant 0 : index
    %1 = vector.load %arg5[%c0_1, %c0_2] : memref<8x128xf32, #tpu.memory_space<vmem>>, vector<8x128xf32>
    %2 = vector.extract_strided_slice %1 {offsets = [0, 0], sizes = [1, 128], strides = [1, 1]} : vector<8x128xf32> to vector<1x128xf32>
    %3 = vector.extract_strided_slice %1 {offsets = [1, 0], sizes = [1, 128], strides = [1, 1]} : vector<8x128xf32> to vector<1x128xf32>
    %4 = vector.extract_strided_slice %1 {offsets = [2, 0], sizes = [1, 128], strides = [1, 1]} : vector<8x128xf32> to vector<1x128xf32>
    %5 = vector.extract_strided_slice %1 {offsets = [3, 0], sizes = [1, 128], strides = [1, 1]} : vector<8x128xf32> to vector<1x128xf32>
    %6 = vector.extract_strided_slice %1 {offsets = [4, 0], sizes = [1, 128], strides = [1, 1]} : vector<8x128xf32> to vector<1x128xf32>
    %7 = vector.extract_strided_slice %1 {offsets = [5, 0], sizes = [1, 128], strides = [1, 1]} : vector<8x128xf32> to vector<1x128xf32>
    %8 = vector.extract_strided_slice %1 {offsets = [6, 0], sizes = [1, 128], strides = [1, 1]} : vector<8x128xf32> to vector<1x128xf32>
    %c0_3 = arith.constant 0 : index
    %c0_4 = arith.constant 0 : index
    %9 = vector.load %arg1[%c0_3, %c0_4] : memref<128x128xf32, #tpu.memory_space<vmem>>, vector<128x128xf32>
    %cst = arith.constant dense<0.000000e+00> : vector<128x128xf32>
    %10 = tpu.matmul %0, %9, %cst {dimension_numbers = #tpu.dot_dimension_numbers<[1], [0], [0], [1], [0, 0, 1, 1], [], []>} : vector<128x128xf32>, vector<128x128xf32>, vector<128x128xf32> -> vector<128x128xf32>
    %cst_5 = arith.constant dense<0.000000e+00> : vector<128xf32>
    %11 = vector.multi_reduction <add>, %10, %cst_5 [0] : vector<128x128xf32> to vector<128xf32>
    %12 = vector.shape_cast %11 : vector<128xf32> to vector<1x128xf32>
    %cst_6 = arith.constant 1.280000e+02 : f32
    %13 = vector.broadcast %cst_6 : f32 to vector<1x128xf32>
    %14 = arith.divf %12, %13 : vector<1x128xf32>
    %15 = arith.mulf %10, %10 : vector<128x128xf32>
    %cst_7 = arith.constant dense<0.000000e+00> : vector<128xf32>
    %16 = vector.multi_reduction <add>, %15, %cst_7 [0] : vector<128x128xf32> to vector<128xf32>
    %17 = vector.shape_cast %16 : vector<128xf32> to vector<1x128xf32>
    %cst_8 = arith.constant 1.280000e+02 : f32
    %18 = vector.broadcast %cst_8 : f32 to vector<1x128xf32>
    %19 = arith.divf %17, %18 : vector<1x128xf32>
    %20 = arith.mulf %14, %14 : vector<1x128xf32>
    %21 = arith.subf %19, %20 : vector<1x128xf32>
    %cst_9 = arith.constant 0.000000e+00 : f32
    %22 = vector.broadcast %cst_9 : f32 to vector<1x128xf32>
    %23 = arith.maximumf %21, %22 : vector<1x128xf32>
    %cst_10 = arith.constant 9.99999974E-6 : f32
    %24 = vector.broadcast %cst_10 : f32 to vector<1x128xf32>
    %25 = arith.addf %23, %24 : vector<1x128xf32>
    %26 = math.rsqrt %25 : vector<1x128xf32>
    %27 = arith.mulf %2, %26 : vector<1x128xf32>
    %28 = arith.mulf %14, %27 : vector<1x128xf32>
    %29 = arith.subf %3, %28 : vector<1x128xf32>
    %30 = vector.broadcast %27 : vector<1x128xf32> to vector<128x128xf32>
    %31 = arith.mulf %10, %30 : vector<128x128xf32>
    %32 = vector.broadcast %29 : vector<1x128xf32> to vector<128x128xf32>
    %33 = arith.addf %31, %32 : vector<128x128xf32>
    %34 = math.tanh %33 : vector<128x128xf32>
    %c0_11 = arith.constant 0 : index
    %c0_12 = arith.constant 0 : index
    %35 = vector.load %arg2[%c0_11, %c0_12] : memref<128x128xf32, #tpu.memory_space<vmem>>, vector<128x128xf32>
    %cst_13 = arith.constant dense<0.000000e+00> : vector<128x128xf32>
    %36 = tpu.matmul %34, %35, %cst_13 {dimension_numbers = #tpu.dot_dimension_numbers<[1], [0], [0], [1], [0, 0, 1, 1], [], []>} : vector<128x128xf32>, vector<128x128xf32>, vector<128x128xf32> -> vector<128x128xf32>
    %cst_14 = arith.constant dense<0.000000e+00> : vector<128xf32>
    %37 = vector.multi_reduction <add>, %36, %cst_14 [0] : vector<128x128xf32> to vector<128xf32>
    %38 = vector.shape_cast %37 : vector<128xf32> to vector<1x128xf32>
    %cst_15 = arith.constant 1.280000e+02 : f32
    %39 = vector.broadcast %cst_15 : f32 to vector<1x128xf32>
    %40 = arith.divf %38, %39 : vector<1x128xf32>
    %41 = arith.mulf %36, %36 : vector<128x128xf32>
    %cst_16 = arith.constant dense<0.000000e+00> : vector<128xf32>
    %42 = vector.multi_reduction <add>, %41, %cst_16 [0] : vector<128x128xf32> to vector<128xf32>
    %43 = vector.shape_cast %42 : vector<128xf32> to vector<1x128xf32>
    %cst_17 = arith.constant 1.280000e+02 : f32
    %44 = vector.broadcast %cst_17 : f32 to vector<1x128xf32>
    %45 = arith.divf %43, %44 : vector<1x128xf32>
    %46 = arith.mulf %40, %40 : vector<1x128xf32>
    %47 = arith.subf %45, %46 : vector<1x128xf32>
    %cst_18 = arith.constant 0.000000e+00 : f32
    %48 = vector.broadcast %cst_18 : f32 to vector<1x128xf32>
    %49 = arith.maximumf %47, %48 : vector<1x128xf32>
    %cst_19 = arith.constant 9.99999974E-6 : f32
    %50 = vector.broadcast %cst_19 : f32 to vector<1x128xf32>
    %51 = arith.addf %49, %50 : vector<1x128xf32>
    %52 = math.rsqrt %51 : vector<1x128xf32>
    %53 = arith.mulf %4, %52 : vector<1x128xf32>
    %54 = arith.mulf %40, %53 : vector<1x128xf32>
    %55 = arith.subf %5, %54 : vector<1x128xf32>
    %56 = vector.broadcast %53 : vector<1x128xf32> to vector<128x128xf32>
    %57 = arith.mulf %36, %56 : vector<128x128xf32>
    %58 = vector.broadcast %55 : vector<1x128xf32> to vector<128x128xf32>
    %59 = arith.addf %57, %58 : vector<128x128xf32>
    %60 = math.tanh %59 : vector<128x128xf32>
    %c0_20 = arith.constant 0 : index
    %c0_21 = arith.constant 0 : index
    %61 = vector.load %arg3[%c0_20, %c0_21] : memref<128x128xf32, #tpu.memory_space<vmem>>, vector<128x128xf32>
    %cst_22 = arith.constant dense<0.000000e+00> : vector<128x128xf32>
    %62 = tpu.matmul %60, %61, %cst_22 {dimension_numbers = #tpu.dot_dimension_numbers<[1], [0], [0], [1], [0, 0, 1, 1], [], []>} : vector<128x128xf32>, vector<128x128xf32>, vector<128x128xf32> -> vector<128x128xf32>
    %63 = arith.addf %62, %10 : vector<128x128xf32>
    %cst_23 = arith.constant 5.000000e-01 : f32
    %64 = vector.broadcast %cst_23 : f32 to vector<128x128xf32>
    %65 = arith.mulf %63, %64 : vector<128x128xf32>
    %cst_24 = arith.constant dense<0.000000e+00> : vector<128xf32>
    %66 = vector.multi_reduction <add>, %65, %cst_24 [0] : vector<128x128xf32> to vector<128xf32>
    %67 = vector.shape_cast %66 : vector<128xf32> to vector<1x128xf32>
    %cst_25 = arith.constant 1.280000e+02 : f32
    %68 = vector.broadcast %cst_25 : f32 to vector<1x128xf32>
    %69 = arith.divf %67, %68 : vector<1x128xf32>
    %70 = arith.mulf %65, %65 : vector<128x128xf32>
    %cst_26 = arith.constant dense<0.000000e+00> : vector<128xf32>
    %71 = vector.multi_reduction <add>, %70, %cst_26 [0] : vector<128x128xf32> to vector<128xf32>
    %72 = vector.shape_cast %71 : vector<128xf32> to vector<1x128xf32>
    %cst_27 = arith.constant 1.280000e+02 : f32
    %73 = vector.broadcast %cst_27 : f32 to vector<1x128xf32>
    %74 = arith.divf %72, %73 : vector<1x128xf32>
    %75 = arith.mulf %69, %69 : vector<1x128xf32>
    %76 = arith.subf %74, %75 : vector<1x128xf32>
    %cst_28 = arith.constant 0.000000e+00 : f32
    %77 = vector.broadcast %cst_28 : f32 to vector<1x128xf32>
    %78 = arith.maximumf %76, %77 : vector<1x128xf32>
    %cst_29 = arith.constant 9.99999974E-6 : f32
    %79 = vector.broadcast %cst_29 : f32 to vector<1x128xf32>
    %80 = arith.addf %78, %79 : vector<1x128xf32>
    %81 = math.rsqrt %80 : vector<1x128xf32>
    %82 = arith.mulf %6, %81 : vector<1x128xf32>
    %83 = arith.mulf %69, %82 : vector<1x128xf32>
    %84 = arith.subf %7, %83 : vector<1x128xf32>
    %85 = vector.broadcast %82 : vector<1x128xf32> to vector<128x128xf32>
    %86 = arith.mulf %65, %85 : vector<128x128xf32>
    %87 = vector.broadcast %84 : vector<1x128xf32> to vector<128x128xf32>
    %88 = arith.addf %86, %87 : vector<128x128xf32>
    %89 = math.tanh %88 : vector<128x128xf32>
    %c0_30 = arith.constant 0 : index
    %c0_31 = arith.constant 0 : index
    %90 = vector.load %arg4[%c0_30, %c0_31] : memref<128x128xf32, #tpu.memory_space<vmem>>, vector<128x128xf32>
    %cst_32 = arith.constant dense<0.000000e+00> : vector<128x128xf32>
    %91 = tpu.matmul %89, %90, %cst_32 {dimension_numbers = #tpu.dot_dimension_numbers<[1], [0], [0], [1], [0, 0, 1, 1], [], []>} : vector<128x128xf32>, vector<128x128xf32>, vector<128x128xf32> -> vector<128x128xf32>
    %92 = vector.broadcast %8 : vector<1x128xf32> to vector<128x128xf32>
    %93 = arith.addf %91, %92 : vector<128x128xf32>
    %c0_33 = arith.constant 0 : index
    %c0_34 = arith.constant 0 : index
    %94 = vector.load %arg6[%c0_33, %c0_34] : memref<128x128xf32, #tpu.memory_space<vmem>>, vector<128x128xf32>
    tpu.vector_store %arg6[%c0_33, %c0_34], %93 {strides = array<i32>} : memref<128x128xf32, #tpu.memory_space<vmem>>, vector<128x128xf32>,
    return
  }
}

</mosaic_0001>

<bundles_post_ra>
// kernel: tpu_custom_call.1
= control target key start
LH: loop header
LB: loop body
LE: loop exit
PB: predicated region body
PF: predicated region fallthrough
CT: control target
= control target key end

     0   :  { %11 = vsyncpa [#allocation3], 0  ;;  %s1612_s0 = inlined_call_operand.hbm [shape: f32[128,128], index: 0, kind: input, shape index: {}]   ;;  %s1613_s1 = inlined_call_operand.hbm [shape: f32[128,128], index: 1, kind: input, shape index: {}]   ;;  %s1614_s2 = inlined_call_operand.hbm [shape: f32[128,128], index: 2, kind: input, shape index: {}]   ;;  %s1615_s3 = inlined_call_operand.hbm [shape: f32[128,128], index: 3, kind: input, shape index: {}]   ;;  %s1616_s4 = inlined_call_operand.hbm [shape: f32[128,128], index: 4, kind: input, shape index: {}]   ;;  %s1617_s5 = inlined_call_operand.hbm [shape: f32[8,128], index: 5, kind: input, shape index: {}]   ;;  %s1618_s6 = inlined_call_operand.hbm [shape: f32[128,128], index: 6, kind: output, shape index: {}]  }
   0x1   :  { %12 = vsyncpa [#allocation6], 0 }
   0x2   :  { %13 = vsyncpa [#allocation9], 0 }
   0x3   :  { %14 = vsyncpa [#allocation12], 0 }
   0x4   :  { %15 = vsyncpa [#allocation4], 0  ;;  %s33_s23 = sshll.u32 %s1613_s1, 4  ;;  %s1202_s24 = smov [#allocation5]   ;;  %s34_s23 = int_to_ptr.hbm [resolvable:$true] %s33_s23 }
   0x5   :  { %s35_s25 = sshll.u32 %s1202_s24, 4  ;;  %s59_s28 = sshll.u32 %s1615_s3, 4  ;;  %s36_s25 = int_to_ptr.vmem [resolvable:$true] %s35_s25  ;;  %s60_s28 = int_to_ptr.hbm [resolvable:$true] %s59_s28 }
   0x6   :  { %s1203_s29 = smov 128   ;;  %s1204_s30 = smov 8  }
   0x7   :  { %41 = dma.hbm_to_vmem [thread:$0]  %s34_s23, 2048, %s36_s25, [#allocation6], %s1203_s29, %s1203_s29, %s1204_s30  }
   0x8   :  { %s1205_s7 = smov [#allocation8]   ;;  %s20_s1 = sshll.u32 %s1612_s0, 4  ;;  %s21_s1 = int_to_ptr.hbm [resolvable:$true] %s20_s1 }
   0x9   :  { %s61_s8 = sshll.u32 %s1205_s7, 4  ;;  %s46_s12 = sshll.u32 %s1614_s2, 4  ;;  %s62_s8 = int_to_ptr.vmem [resolvable:$true] %s61_s8  ;;  %s47_s12 = int_to_ptr.hbm [resolvable:$true] %s46_s12 }
   0xa   :  { %67 = dma.hbm_to_vmem [thread:$0]  %s60_s28, 2048, %s62_s8, [#allocation9], %s1203_s29, %s1203_s29, %s1204_s30  }
   0xb   :  { %s1206_s13 = smov [#allocation2]   ;;  %s1207_s15 = smov [#allocation7]  }
   0xc   :  { %s22_s14 = sshll.u32 %s1206_s13, 4  ;;  %s48_s0 = sshll.u32 %s1207_s15, 4  ;;  %s23_s14 = int_to_ptr.vmem [resolvable:$true] %s22_s14  ;;  %s49_s0 = int_to_ptr.vmem [resolvable:$true] %s48_s0 }
   0xd   :  { %28 = dma.hbm_to_vmem [thread:$0]  %s21_s1, 2048, %s23_s14, [#allocation3], %s1203_s29, %s1203_s29, %s1204_s30  }
   0xe   :  { %s72_s18 = sshll.u32 %s1616_s4, 4  ;;  %s86_s20 = sshll.u32 %s1617_s5, 4  ;;  %s73_s18 = int_to_ptr.hbm [resolvable:$true] %s72_s18  ;;  %s87_s20 = int_to_ptr.hbm [resolvable:$true] %s86_s20 }
   0xf   :  { %54 = dma.hbm_to_vmem [thread:$0]  %s47_s12, 2048, %s49_s0, [#allocation6], %s1203_s29, %s1203_s29, %s1204_s30  }
  0x10   :  { %s1208_s21 = smov [#allocation10]   ;;  %s1209_s23 = smov [#allocation11]  }
  0x11   :  { %s74_s22 = sshll.u32 %s1208_s21, 4  ;;  %s88_s4 = sshll.u32 %s1209_s23, 4  ;;  %s75_s22 = int_to_ptr.vmem [resolvable:$true] %s74_s22  ;;  %s89_s4 = int_to_ptr.vmem [resolvable:$true] %s88_s4 }
  0x12   :  { %80 = dma.hbm_to_vmem [thread:$0]  %s73_s18, 2048, %s75_s22, [#allocation9], %s1203_s29, %s1203_s29, %s1204_s30  }
  0x13   :  { %91 = dma.hbm_to_vmem [thread:$0]  %s87_s20, 128, %s89_s4, [#allocation12]  }
  0x14   :  { %1192 = dma.done.wait [#allocation3], 2048  }
  0x15   :  { %1193 = vsyncadd [#allocation3], 4294965248 }
  0x16   :  { %1194 = dma.done.wait [#allocation6], 4096  }
  0x17   :  { %1195 = vsyncadd [#allocation6], 4294963200 }
  0x18   :  { %1196 = dma.done.wait [#allocation9], 4096  }
  0x19   :  { %1197 = vsyncadd [#allocation9], 4294963200 }
  0x1a   :  { %1198 = dma.done.wait [#allocation12], 128  }
  0x1b   :  { %1199 = vsyncadd [#allocation12], 4294967168  ;;  %v148_v0 = vld [vmem:[#allocation5 + $0x78] sm:$0xff]  ;;  %v147_v1 = vld [vmem:[#allocation5 + $0x70] sm:$0xff]  ;;  %s1211_s5 = smov [#allocation13]   ;;  %s893_s27 = sshll.u32 %s1618_s6, 4  ;;  %s894_s27 = int_to_ptr.hbm [resolvable:$true] %s893_s27 }
  0x1c   :  { %149 = vmatpush.msra.mxu0 %v148_v0  ;;  %v146_v2 = vld [vmem:[#allocation5 + $0x68] sm:$0xff]  ;;  %v145_v3 = vld [vmem:[#allocation5 + $0x60] sm:$0xff]  ;;  %v144_v4 = vld [vmem:[#allocation5 + $0x58] sm:$0xff]  ;;  %s891_s24 = sshll.u32 %s1211_s5, 4  ;;  %s892_s24 = int_to_ptr.vmem [resolvable:$true] %s891_s24 }
  0x1d   :  { %v143_v5 = vld [vmem:[#allocation5 + $0x50] sm:$0xff]  ;;  %v142_v6 = vld [vmem:[#allocation5 + $0x48] sm:$0xff]  ;;  %v141_v7 = vld [vmem:[#allocation5 + $0x40] sm:$0xff] }
  0x1e   :  { %150 = vmatpush.msra.mxu0 %v147_v1  ;;  %v140_v8 = vld [vmem:[#allocation5 + $0x38] sm:$0xff]  ;;  %v139_v9 = vld [vmem:[#allocation5 + $0x30] sm:$0xff]  ;;  %v138_v10 = vld [vmem:[#allocation5 + $0x28] sm:$0xff] }
  0x1f   :  { %v137_v11 = vld [vmem:[#allocation5 + $0x20] sm:$0xff]  ;;  %v136_v12 = vld [vmem:[#allocation5 + $0x18] sm:$0xff]  ;;  %v135_v13 = vld [vmem:[#allocation5 + $0x10] sm:$0xff] }
  0x20   :  { %151 = vmatpush.msra.mxu0 %v146_v2  ;;  %v134_v14 = vld [vmem:[#allocation5 + $0x8] sm:$0xff]  ;;  %v133_v15 = vld [vmem:[#allocation5] sm:$0xff]  ;;  %v118_v18 = vld [vmem:[#allocation2 + $0x10] sm:$0xff] }
  0x21   :  { %v116_v16 = vld [vmem:[#allocation2] sm:$0xff]  ;;  %v117_v17 = vld [vmem:[#allocation2 + $0x8] sm:$0xff]  ;;  %v119_v19 = vld [vmem:[#allocation2 + $0x18] sm:$0xff] }
  0x22   :  { %152 = vmatpush.msra.mxu0 %v145_v3  ;;  %v120_v20 = vld [vmem:[#allocation2 + $0x20] sm:$0xff]  ;;  %v121_v21 = vld [vmem:[#allocation2 + $0x28] sm:$0xff]  ;;  %v122_v22 = vld [vmem:[#allocation2 + $0x30] sm:$0xff] }
  0x23   :  { %v123_v23 = vld [vmem:[#allocation2 + $0x38] sm:$0xff]  ;;  %v124_v24 = vld [vmem:[#allocation2 + $0x40] sm:$0xff]  ;;  %v125_v25 = vld [vmem:[#allocation2 + $0x48] sm:$0xff] }
  0x24   :  { %153 = vmatpush.msra.mxu0 %v144_v4  ;;  %v126_v26 = vld [vmem:[#allocation2 + $0x50] sm:$0xff]  ;;  %v127_v27 = vld [vmem:[#allocation2 + $0x58] sm:$0xff]  ;;  %v128_v28 = vld [vmem:[#allocation2 + $0x60] sm:$0xff] }
  0x25   :  { %v129_v29 = vld [vmem:[#allocation2 + $0x68] sm:$0xff]  ;;  %v130_v30 = vld [vmem:[#allocation2 + $0x70] sm:$0xff]  ;;  %v131_v31 = vld [vmem:[#allocation2 + $0x78] sm:$0xff] }
  0x26   :  { %154 = vmatpush.msra.mxu0 %v143_v5 }
  0x28   :  { %155 = vmatpush.msra.mxu0 %v142_v6 }
  0x2a   :  { %156 = vmatpush.msra.mxu0 %v141_v7  ;;  %v1210_v7 = vmov 128.0  }
  0x2b   :  { %919 = vrcp.f32 %v1210_v7 }
  0x2c   :  { %157 = vmatpush.msra.mxu0 %v140_v8 }
  0x2e   :  { %158 = vmatpush.msra.mxu0 %v139_v9 }
  0x30   :  { %159 = vmatpush.msra.mxu0 %v138_v10 }
  0x32   :  { %160 = vmatpush.msra.mxu0 %v137_v11 }
  0x34   :  { %161 = vmatpush.msra.mxu0 %v136_v12 }
  0x36   :  { %162 = vmatpush.msra.mxu0 %v135_v13 }
  0x38   :  { %163 = vmatpush.msra.mxu0 %v134_v14 }
  0x3a   :  { %164 = vmatpush.msra.mxu0 %v133_v15  ;;  %v920_v15 = vpop.eup %919 }
  0x3b   :  { %165 = vmatmul.f32.vlgmr.msra.gmra.mxu0 %v116_v16  ;;  %vm240_vm0 = vweird.f32 %v920_v15 }
  0x43   :  { %168 = vmatmul.f32.gmra.mxu0 %v117_v17 }
  0x4b   :  { %171 = vmatmul.f32.gmra.mxu0 %v118_v18 }
  0x53   :  { %174 = vmatmul.f32.gmra.mxu0 %v119_v19 }
  0x5b   :  { %177 = vmatmul.f32.gmra.mxu0 %v120_v20 }
  0x63   :  { %180 = vmatmul.f32.gmra.mxu0 %v121_v21 }
  0x6b   :  { %183 = vmatmul.f32.gmra.mxu0 %v122_v22  ;;  %v236_v22 = vmul.f32 128.0, %v920_v15 }
  0x73   :  { %186 = vmatmul.f32.gmra.mxu0 %v123_v23 }
  0x7b   :  { %189 = vmatmul.f32.gmra.mxu0 %v124_v24 }
  0x83   :  { %192 = vmatmul.f32.gmra.mxu0 %v125_v25 }
  0x8b   :  { %195 = vmatmul.f32.gmra.mxu0 %v126_v26  ;;  %v366_v26 = vld [vmem:[#allocation7 + $0x78] sm:$0xff] }
  0x8c   :  { %367 = vmatpush.msra.mxu1 %v366_v26 }
  0x93   :  { %198 = vmatmul.f32.gmra.mxu0 %v127_v27 }
  0x9b   :  { %201 = vmatmul.f32.gmra.mxu0 %v128_v28 }
  0xa3   :  { %204 = vmatmul.f32.gmra.mxu0 %v129_v29 }
  0xab   :  { %207 = vmatmul.f32.gmra.mxu0 %v130_v30  ;;  %v237_v30 = vsub.f32 1.0, %v236_v22 }
  0xb3   :  { %210 = vmatmul.f32.gmra.mxu0 %v131_v31  ;;  %v365_v31 = vld [vmem:[#allocation7 + $0x70] sm:$0xff] }
  0xb4   :  { %368 = vmatpush.msra.mxu1 %v365_v31 }
  0xb8   :  { %v1280_v32 = vpop.f32.mrf.mxu0 }
  0xb9   :  { %v243_v45 = vmul.f32 %v1280_v32, %v1280_v32 }
  0xc0   :  { %v1282_v33 = vpop.f32.mrf.mxu0 }
  0xc1   :  { %v244_v44 = vmul.f32 %v1282_v33, %v1282_v33  ;;  %v214_v46 = vadd.f32 %v1282_v33, %v1280_v32 }
  0xc3   :  { %v259_v48 = vadd.f32 %v244_v44, %v243_v45 }
  0xc8   :  { %v1284_v34 = vpop.f32.mrf.mxu0 }
  0xc9   :  { %v245_v47 = vmul.f32 %v1284_v34, %v1284_v34  ;;  %v215_v49 = vadd.f32 %v214_v46, %v1284_v34 }
  0xcb   :  { %v260_v52 = vadd.f32 %v259_v48, %v245_v47  ;;  %v364_v47 = vld [vmem:[#allocation7 + $0x68] sm:$0xff] }
  0xcc   :  { %369 = vmatpush.msra.mxu1 %v364_v47 }
  0xd0   :  { %v1286_v35 = vpop.f32.mrf.mxu0 }
  0xd1   :  { %v246_v50 = vmul.f32 %v1286_v35, %v1286_v35  ;;  %v216_v53 = vadd.f32 %v215_v49, %v1286_v35 }
  0xd3   :  { %v261_v55 = vadd.f32 %v260_v52, %v246_v50  ;;  %v238_v50 = vmul.f32 %v920_v15, %v237_v30  ;;  %v363_v52 = vld [vmem:[#allocation7 + $0x60] sm:$0xff] }
  0xd4   :  { %370 = vmatpush.msra.mxu1 %v363_v52 }
  0xd8   :  { %v1288_v36 = vpop.f32.mrf.mxu0 }
  0xd9   :  { %v247_v54 = vmul.f32 %v1288_v36, %v1288_v36  ;;  %v217_v56 = vadd.f32 %v216_v53, %v1288_v36 }
  0xdb   :  { %v262_v58 = vadd.f32 %v261_v55, %v247_v54  ;;  %v362_v55 = vld [vmem:[#allocation7 + $0x58] sm:$0xff] }
  0xdc   :  { %371 = vmatpush.msra.mxu1 %v362_v55 }
  0xe0   :  { %v1290_v37 = vpop.f32.mrf.mxu0 }
  0xe1   :  { %v248_v57 = vmul.f32 %v1290_v37, %v1290_v37  ;;  %v218_v59 = vadd.f32 %v217_v56, %v1290_v37 }
  0xe3   :  { %v263_v61 = vadd.f32 %v262_v58, %v248_v57  ;;  %v239_v58 = vadd.f32 %v920_v15, %v238_v50 }
  0xe8   :  { %v1292_v38 = vpop.f32.mrf.mxu0 }
  0xe9   :  { %v249_v60 = vmul.f32 %v1292_v38, %v1292_v38  ;;  %v219_v62 = vadd.f32 %v218_v59, %v1292_v38  ;;  %v361_v59 = vld [vmem:[#allocation7 + $0x50] sm:$0xff] }
  0xea   :  { %372 = vmatpush.msra.mxu1 %v361_v59 }
  0xeb   :  { %v264_v1 = vadd.f32 %v263_v61, %v249_v60 }
  0xf0   :  { %v1294_v39 = vpop.f32.mrf.mxu0 }
  0xf1   :  { %v250_v63 = vmul.f32 %v1294_v39, %v1294_v39  ;;  %v220_v2 = vadd.f32 %v219_v62, %v1294_v39  ;;  %v360_v62 = vld [vmem:[#allocation7 + $0x48] sm:$0xff] }
  0xf2   :  { %373 = vmatpush.msra.mxu1 %v360_v62 }
  0xf3   :  { %v265_v4 = vadd.f32 %v264_v1, %v250_v63 }
  0xf8   :  { %v1296_v40 = vpop.f32.mrf.mxu0 }
  0xf9   :  { %v251_v3 = vmul.f32 %v1296_v40, %v1296_v40  ;;  %v221_v5 = vadd.f32 %v220_v2, %v1296_v40  ;;  %v1360_v2 = vsel %vm240_vm0, %v920_v15, %v239_v58 }
  0xfb   :  { %v266_v8 = vadd.f32 %v265_v4, %v251_v3  ;;  %v359_v3 = vld [vmem:[#allocation7 + $0x40] sm:$0xff] }
  0xfc   :  { %374 = vmatpush.msra.mxu1 %v359_v3 }
 0x100   :  { %v1298_v41 = vpop.f32.mrf.mxu0 }
 0x101   :  { %v252_v6 = vmul.f32 %v1298_v41, %v1298_v41  ;;  %v222_v9 = vadd.f32 %v221_v5, %v1298_v41 }
 0x103   :  { %v267_v11 = vadd.f32 %v266_v8, %v252_v6  ;;  %v358_v6 = vld [vmem:[#allocation7 + $0x38] sm:$0xff] }
 0x104   :  { %375 = vmatpush.msra.mxu1 %v358_v6 }
 0x108   :  { %v1300_v42 = vpop.f32.mrf.mxu0 }
 0x109   :  { %v253_v10 = vmul.f32 %v1300_v42, %v1300_v42  ;;  %v223_v12 = vadd.f32 %v222_v9, %v1300_v42  ;;  %v357_v9 = vld [vmem:[#allocation7 + $0x30] sm:$0xff] }
 0x10a   :  { %376 = vmatpush.msra.mxu1 %v357_v9 }
 0x10b   :  { %v268_v16 = vadd.f32 %v267_v11, %v253_v10 }
 0x110   :  { %v1302_v43 = vpop.f32.mrf.mxu0 }
 0x111   :  { %v254_v13 = vmul.f32 %v1302_v43, %v1302_v43  ;;  %v224_v17 = vadd.f32 %v223_v12, %v1302_v43  ;;  %v356_v12 = vld [vmem:[#allocation7 + $0x28] sm:$0xff] }
 0x112   :  { %377 = vmatpush.msra.mxu1 %v356_v12 }
 0x113   :  { %v269_v19 = vadd.f32 %v268_v16, %v254_v13  ;;  %v355_v16 = vld [vmem:[#allocation7 + $0x20] sm:$0xff] }
 0x114   :  { %378 = vmatpush.msra.mxu1 %v355_v16 }
 0x118   :  { %v1315_v51 = vpop.f32.mrf.mxu0 }
 0x119   :  { %v255_v18 = vmul.f32 %v1315_v51, %v1315_v51  ;;  %v225_v20 = vadd.f32 %v224_v17, %v1315_v51  ;;  %v354_v17 = vld [vmem:[#allocation7 + $0x18] sm:$0xff] }
 0x11a   :  { %379 = vmatpush.msra.mxu1 %v354_v17 }
 0x11b   :  { %v270_v23 = vadd.f32 %v269_v19, %v255_v18  ;;  %v353_v19 = vld [vmem:[#allocation7 + $0x10] sm:$0xff] }
 0x11c   :  { %380 = vmatpush.msra.mxu1 %v353_v19 }
 0x120   :  { %v1329_v0 = vpop.f32.mrf.mxu0 }
 0x121   :  { %v256_v21 = vmul.f32 %v1329_v0, %v1329_v0  ;;  %v226_v24 = vadd.f32 %v225_v20, %v1329_v0  ;;  %v352_v20 = vld [vmem:[#allocation7 + $0x8] sm:$0xff] }
 0x122   :  { %381 = vmatpush.msra.mxu1 %v352_v20 }
 0x123   :  { %v271_v27 = vadd.f32 %v270_v23, %v256_v21  ;;  %v351_v21 = vld [vmem:[#allocation7] sm:$0xff] }
 0x124   :  { %382 = vmatpush.msra.mxu1 %v351_v21 }
 0x128   :  { %v1343_v14 = vpop.f32.mrf.mxu0 }
 0x129   :  { %v257_v25 = vmul.f32 %v1343_v14, %v1343_v14  ;;  %v227_v28 = vadd.f32 %v226_v24, %v1343_v14 }
 0x12b   :  { %v272_v46 = vadd.f32 %v271_v27, %v257_v25  ;;  %v1364_v27 = vld [vmem:[#allocation11] sm:$0xff] }
 0x130   :  { %v1355_v29 = vpop.f32.mrf.mxu0 }
 0x131   :  { %v228_v44 = vadd.f32 %v227_v28, %v1355_v29  ;;  %v258_v45 = vmul.f32 %v1355_v29, %v1355_v29 }
 0x133   :  { %v229_v48 = vrot.slane %v228_v44, 4  ;;  %v273_v49 = vadd.f32 %v272_v46, %v258_v45 }
 0x135   :  { %v230_v53 = vadd.f32 %v229_v48, %v228_v44  ;;  %v274_v54 = vrot.slane %v273_v49, 4 }
 0x137   :  { %v231_v56 = vrot.slane %v230_v53, 2  ;;  %v275_v57 = vadd.f32 %v274_v54, %v273_v49 }
 0x139   :  { %v232_v60 = vadd.f32 %v231_v56, %v230_v53  ;;  %v276_v61 = vrot.slane %v275_v57, 2 }
 0x13b   :  { %v233_v63 = vrot.slane %v232_v60, 1  ;;  %v277_v1 = vadd.f32 %v276_v61, %v275_v57 }
 0x13d   :  { %v234_v4 = vadd.f32 %v233_v63, %v232_v60  ;;  %v278_v5 = vrot.slane %v277_v1, 1 }
 0x13f   :  { %v242_v7 = vmul.f32 %v1360_v2, %v234_v4  ;;  %v279_v8 = vadd.f32 %v278_v5, %v277_v1 }
 0x141   :  { %v280_v10 = vmul.f32 %v279_v8, %v1360_v2  ;;  %v281_v11 = vmul.f32 %v242_v7, %v242_v7 }
 0x143   :  { %v282_v13 = vsub.f32 %v280_v10, %v281_v11 }
 0x145   :  { %v283_v15 = vmax.f32 %v282_v13, 0.0 }
 0x147   :  { %v284_v18 = vadd.f32 1e-05, %v283_v15 }
 0x149   :  { %921 = vrsqrt.f32 %v284_v18  ;;  %vm291_vm2 = vweird.f32 %v284_v18 }
 0x14f   :  { %v922_v22 = vpop.eup %921 }
 0x150   :  { %v286_v23 = vmul.f32 %v922_v22, %v284_v18  ;;  %vm292_vm1 = vweird.f32 %v922_v22 }
 0x151   :  { %vm293_vm3 = vmor %vm291_vm2, %vm292_vm1 }
 0x152   :  { %v287_v24 = vmul.f32 %v922_v22, %v286_v23 }
 0x154   :  { %v288_v25 = vmul.f32 0.5, %v287_v24 }
 0x156   :  { %v289_v26 = vsub.f32 1.5, %v288_v25 }
 0x158   :  { %v290_v28 = vmul.f32 %v922_v22, %v289_v26 }
 0x15a   :  { %v294_v30 = vsel %vm293_vm3, %v922_v22, %v290_v28 }
 0x15b   :  { %v295_v31 = vmul.f32 %v294_v30, %v1364_v27 }
 0x15d   :  { %v296_v44 = vmul.f32 %v295_v31, %v242_v7  ;;  %v301_v46 = vperm.slane %v295_v31, 0 }
 0x15f   :  { %v298_v45 = vrot.slane %v296_v44, 7  ;;  %v317_v48 = vmul.f32 %v301_v46, %v1355_v29  ;;  %v302_v50 = vmul.f32 %v301_v46, %v1280_v32  ;;  %v310_v54 = vmul.f32 %v301_v46, %v1296_v40 }
 0x160   :  { %v311_v55 = vmul.f32 %v301_v46, %v1298_v41  ;;  %v312_v56 = vmul.f32 %v301_v46, %v1300_v42  ;;  %v313_v57 = vmul.f32 %v301_v46, %v1302_v43  ;;  %v314_v58 = vmul.f32 %v301_v46, %v1315_v51 }
 0x161   :  { %v300_v47 = vsub.f32 %v1364_v27, %v298_v45  ;;  %v315_v61 = vmul.f32 %v301_v46, %v1329_v0  ;;  %v316_v62 = vmul.f32 %v301_v46, %v1343_v14  ;;  %v303_v6 = vmul.f32 %v301_v46, %v1282_v33 }
 0x162   :  { %v304_v9 = vmul.f32 %v301_v46, %v1284_v34  ;;  %v305_v12 = vmul.f32 %v301_v46, %v1286_v35  ;;  %v306_v15 = vmul.f32 %v301_v46, %v1288_v36  ;;  %v307_v19 = vmul.f32 %v301_v46, %v1290_v37 }
 0x163   :  { %v318_v49 = vperm.slane %v300_v47, 1  ;;  %v308_v22 = vmul.f32 %v301_v46, %v1292_v38  ;;  %v309_v25 = vmul.f32 %v301_v46, %v1294_v39 }
 0x165   :  { %v1370_v52 = vadd.f32 %v318_v49, %v317_v48  ;;  %v319_v53 = vadd.f32 %v318_v49, %v302_v50  ;;  %v327_v59 = vadd.f32 %v318_v49, %v310_v54  ;;  %v328_v60 = vadd.f32 %v318_v49, %v311_v55 }
 0x166   :  { %v329_v63 = vadd.f32 %v318_v49, %v312_v56  ;;  %v330_v1 = vadd.f32 %v318_v49, %v313_v57  ;;  %v331_v3 = vadd.f32 %v318_v49, %v314_v58  ;;  %v332_v4 = vadd.f32 %v318_v49, %v315_v61 }
 0x167   :  { %923 = vtanh.f32 %v319_v53  ;;  %v333_v5 = vadd.f32 %v318_v49, %v316_v62  ;;  %v320_v7 = vadd.f32 %v318_v49, %v303_v6  ;;  %v321_v10 = vadd.f32 %v318_v49, %v304_v9 }
 0x168   :  { %v322_v13 = vadd.f32 %v318_v49, %v305_v12  ;;  %v323_v17 = vadd.f32 %v318_v49, %v306_v15  ;;  %v324_v20 = vadd.f32 %v318_v49, %v307_v19  ;;  %v325_v23 = vadd.f32 %v318_v49, %v308_v22 }
 0x169   :  { %925 = vtanh.f32 %v320_v7  ;;  %v326_v26 = vadd.f32 %v318_v49, %v309_v25 }
 0x16a   :  { %927 = vtanh.f32 %v321_v10 }
 0x16b   :  { %929 = vtanh.f32 %v322_v13 }
 0x16c   :  { %931 = vtanh.f32 %v323_v17 }
 0x16d   :  { %v924_v8 = vpop.eup %923  ;;  %933 = vtanh.f32 %v324_v20 }
 0x16e   :  { %383 = vmatmul.f32.vlgmr.msra.gmra.mxu1 %v924_v8  ;;  %935 = vtanh.f32 %v325_v23 }
 0x16f   :  { %v926_v11 = vpop.eup %925  ;;  %937 = vtanh.f32 %v326_v26 }
 0x170   :  { %v928_v16 = vpop.eup %927  ;;  %939 = vtanh.f32 %v327_v59 }
 0x171   :  { %v930_v18 = vpop.eup %929  ;;  %941 = vtanh.f32 %v328_v60 }
 0x172   :  { %v932_v21 = vpop.eup %931  ;;  %943 = vtanh.f32 %v329_v63 }
 0x173   :  { %v934_v24 = vpop.eup %933  ;;  %945 = vtanh.f32 %v330_v1 }
 0x174   :  { %v936_v28 = vpop.eup %935  ;;  %947 = vtanh.f32 %v331_v3 }
 0x175   :  { %v938_v30 = vpop.eup %937  ;;  %949 = vtanh.f32 %v332_v4 }
 0x176   :  { %386 = vmatmul.f32.gmra.mxu1 %v926_v11  ;;  %v940_v31 = vpop.eup %939  ;;  %951 = vtanh.f32 %v333_v5 }
 0x177   :  { %v942_v44 = vpop.eup %941  ;;  %953 = vtanh.f32 %v1370_v52 }
 0x178   :  { %v944_v45 = vpop.eup %943 }
 0x179   :  { %v946_v47 = vpop.eup %945 }
 0x17a   :  { %v948_v46 = vpop.eup %947 }
 0x17b   :  { %v950_v48 = vpop.eup %949 }
 0x17c   :  { %v952_v49 = vpop.eup %951 }
 0x17d   :  { %v954_v50 = vpop.eup %953 }
 0x17e   :  { %389 = vmatmul.f32.gmra.mxu1 %v928_v16 }
 0x186   :  { %392 = vmatmul.f32.gmra.mxu1 %v930_v18 }
 0x18e   :  { %395 = vmatmul.f32.gmra.mxu1 %v932_v21 }
 0x196   :  { %398 = vmatmul.f32.gmra.mxu1 %v934_v24 }
 0x19e   :  { %401 = vmatmul.f32.gmra.mxu1 %v936_v28 }
 0x1a6   :  { %404 = vmatmul.f32.gmra.mxu1 %v938_v30 }
 0x1ae   :  { %407 = vmatmul.f32.gmra.mxu1 %v940_v31 }
 0x1b6   :  { %410 = vmatmul.f32.gmra.mxu1 %v942_v44 }
 0x1be   :  { %413 = vmatmul.f32.gmra.mxu1 %v944_v45 }
 0x1c6   :  { %416 = vmatmul.f32.gmra.mxu1 %v946_v47 }
 0x1ce   :  { %419 = vmatmul.f32.gmra.mxu1 %v948_v46 }
 0x1d6   :  { %422 = vmatmul.f32.gmra.mxu1 %v950_v48 }
 0x1de   :  { %425 = vmatmul.f32.gmra.mxu1 %v952_v49 }
 0x1e6   :  { %428 = vmatmul.f32.gmra.mxu1 %v954_v50 }
 0x1eb   :  { %v1387_v53 = vpop.f32.mrf.mxu1 }
 0x1ec   :  { %v454_v3 = vmul.f32 %v1387_v53, %v1387_v53 }
 0x1f3   :  { %v1389_v54 = vpop.f32.mrf.mxu1 }
 0x1f4   :  { %v455_v1 = vmul.f32 %v1389_v54, %v1389_v54  ;;  %v432_v4 = vadd.f32 %v1389_v54, %v1387_v53 }
 0x1f6   :  { %v470_v6 = vadd.f32 %v455_v1, %v454_v3 }
 0x1fb   :  { %v1391_v55 = vpop.f32.mrf.mxu1 }
 0x1fc   :  { %v456_v5 = vmul.f32 %v1391_v55, %v1391_v55  ;;  %v433_v7 = vadd.f32 %v432_v4, %v1391_v55 }
 0x1fe   :  { %v471_v10 = vadd.f32 %v470_v6, %v456_v5 }
 0x203   :  { %v1393_v56 = vpop.f32.mrf.mxu1 }
 0x204   :  { %v457_v8 = vmul.f32 %v1393_v56, %v1393_v56  ;;  %v434_v11 = vadd.f32 %v433_v7, %v1393_v56 }
 0x206   :  { %v472_v13 = vadd.f32 %v471_v10, %v457_v8 }
 0x20b   :  { %v1395_v57 = vpop.f32.mrf.mxu1 }
 0x20c   :  { %v458_v12 = vmul.f32 %v1395_v57, %v1395_v57  ;;  %v435_v16 = vadd.f32 %v434_v11, %v1395_v57 }
 0x20e   :  { %v473_v17 = vadd.f32 %v472_v13, %v458_v12 }
 0x213   :  { %v1397_v58 = vpop.f32.mrf.mxu1 }
 0x214   :  { %v459_v15 = vmul.f32 %v1397_v58, %v1397_v58  ;;  %v436_v18 = vadd.f32 %v435_v16, %v1397_v58 }
 0x216   :  { %v474_v20 = vadd.f32 %v473_v17, %v459_v15 }
 0x21b   :  { %v1399_v59 = vpop.f32.mrf.mxu1 }
 0x21c   :  { %v460_v19 = vmul.f32 %v1399_v59, %v1399_v59  ;;  %v437_v21 = vadd.f32 %v436_v18, %v1399_v59 }
 0x21e   :  { %v475_v24 = vadd.f32 %v474_v20, %v460_v19 }
 0x223   :  { %v1401_v60 = vpop.f32.mrf.mxu1 }
 0x224   :  { %v461_v22 = vmul.f32 %v1401_v60, %v1401_v60  ;;  %v438_v25 = vadd.f32 %v437_v21, %v1401_v60 }
 0x226   :  { %v476_v28 = vadd.f32 %v475_v24, %v461_v22 }
 0x22b   :  { %v1403_v61 = vpop.f32.mrf.mxu1 }
 0x22c   :  { %v462_v26 = vmul.f32 %v1403_v61, %v1403_v61  ;;  %v439_v30 = vadd.f32 %v438_v25, %v1403_v61 }
 0x22e   :  { %v477_v44 = vadd.f32 %v476_v28, %v462_v26 }
 0x233   :  { %v1405_v52 = vpop.f32.mrf.mxu1 }
 0x234   :  { %v463_v31 = vmul.f32 %v1405_v52, %v1405_v52  ;;  %v440_v45 = vadd.f32 %v439_v30, %v1405_v52 }
 0x236   :  { %v478_v46 = vadd.f32 %v477_v44, %v463_v31  ;;  %v577_v44 = vld [vmem:[#allocation8 + $0x78] sm:$0xff] }
 0x237   :  { %578 = vmatpush.msra.mxu2 %v577_v44  ;;  %v562_v44 = vld [vmem:[#allocation8] sm:$0xff] }
 0x23b   :  { %v1407_v62 = vpop.f32.mrf.mxu1 }
 0x23c   :  { %v464_v47 = vmul.f32 %v1407_v62, %v1407_v62  ;;  %v441_v48 = vadd.f32 %v440_v45, %v1407_v62 }
 0x23e   :  { %v479_v1 = vadd.f32 %v478_v46, %v464_v47  ;;  %v576_v46 = vld [vmem:[#allocation8 + $0x70] sm:$0xff] }
 0x23f   :  { %579 = vmatpush.msra.mxu2 %v576_v46 }
 0x243   :  { %v1409_v63 = vpop.f32.mrf.mxu1 }
 0x244   :  { %v465_v49 = vmul.f32 %v1409_v63, %v1409_v63  ;;  %v442_v3 = vadd.f32 %v441_v48, %v1409_v63 }
 0x246   :  { %v480_v5 = vadd.f32 %v479_v1, %v465_v49  ;;  %v575_v1 = vld [vmem:[#allocation8 + $0x68] sm:$0xff] }
 0x247   :  { %580 = vmatpush.msra.mxu2 %v575_v1 }
 0x24b   :  { %v1422_v9 = vpop.f32.mrf.mxu1 }
 0x24c   :  { %v466_v4 = vmul.f32 %v1422_v9, %v1422_v9  ;;  %v443_v6 = vadd.f32 %v442_v3, %v1422_v9 }
 0x24e   :  { %v481_v8 = vadd.f32 %v480_v5, %v466_v4  ;;  %v574_v5 = vld [vmem:[#allocation8 + $0x60] sm:$0xff] }
 0x24f   :  { %581 = vmatpush.msra.mxu2 %v574_v5 }
 0x253   :  { %v1436_v23 = vpop.f32.mrf.mxu1 }
 0x254   :  { %v467_v7 = vmul.f32 %v1436_v23, %v1436_v23  ;;  %v444_v10 = vadd.f32 %v443_v6, %v1436_v23 }
 0x256   :  { %v482_v12 = vadd.f32 %v481_v8, %v467_v7  ;;  %v573_v7 = vld [vmem:[#allocation8 + $0x58] sm:$0xff] }
 0x257   :  { %582 = vmatpush.msra.mxu2 %v573_v7 }
 0x25b   :  { %v1450_v50 = vpop.f32.mrf.mxu1 }
 0x25c   :  { %v468_v11 = vmul.f32 %v1450_v50, %v1450_v50  ;;  %v445_v13 = vadd.f32 %v444_v10, %v1450_v50  ;;  %v572_v10 = vld [vmem:[#allocation8 + $0x50] sm:$0xff] }
 0x25d   :  { %583 = vmatpush.msra.mxu2 %v572_v10 }
 0x25e   :  { %v483_v15 = vadd.f32 %v482_v12, %v468_v11  ;;  %v571_v12 = vld [vmem:[#allocation8 + $0x48] sm:$0xff] }
 0x25f   :  { %584 = vmatpush.msra.mxu2 %v571_v12 }
 0x263   :  { %v1462_v16 = vpop.f32.mrf.mxu1 }
 0x264   :  { %v446_v17 = vadd.f32 %v445_v13, %v1462_v16  ;;  %v469_v18 = vmul.f32 %v1462_v16, %v1462_v16  ;;  %v570_v13 = vld [vmem:[#allocation8 + $0x40] sm:$0xff] }
 0x265   :  { %585 = vmatpush.msra.mxu2 %v570_v13 }
 0x266   :  { %v447_v19 = vrot.slane %v446_v17, 4  ;;  %v484_v20 = vadd.f32 %v483_v15, %v469_v18  ;;  %v569_v15 = vld [vmem:[#allocation8 + $0x38] sm:$0xff]  ;;  %v567_v18 = vld [vmem:[#allocation8 + $0x28] sm:$0xff] }
 0x267   :  { %586 = vmatpush.msra.mxu2 %v569_v15 }
 0x268   :  { %v448_v21 = vadd.f32 %v447_v19, %v446_v17  ;;  %v485_v22 = vrot.slane %v484_v20, 4  ;;  %v568_v17 = vld [vmem:[#allocation8 + $0x30] sm:$0xff] }
 0x269   :  { %587 = vmatpush.msra.mxu2 %v568_v17 }
 0x26a   :  { %v449_v24 = vrot.slane %v448_v21, 2  ;;  %v486_v25 = vadd.f32 %v485_v22, %v484_v20 }
 0x26b   :  { %588 = vmatpush.msra.mxu2 %v567_v18 }
 0x26c   :  { %v450_v26 = vadd.f32 %v449_v24, %v448_v21  ;;  %v487_v28 = vrot.slane %v486_v25, 2  ;;  %v566_v21 = vld [vmem:[#allocation8 + $0x20] sm:$0xff]  ;;  %v565_v24 = vld [vmem:[#allocation8 + $0x18] sm:$0xff] }
 0x26d   :  { %589 = vmatpush.msra.mxu2 %v566_v21 }
 0x26e   :  { %v451_v30 = vrot.slane %v450_v26, 1  ;;  %v488_v31 = vadd.f32 %v487_v28, %v486_v25 }
 0x26f   :  { %590 = vmatpush.msra.mxu2 %v565_v24 }
 0x270   :  { %v452_v45 = vadd.f32 %v451_v30, %v450_v26  ;;  %v489_v47 = vrot.slane %v488_v31, 1  ;;  %v564_v26 = vld [vmem:[#allocation8 + $0x10] sm:$0xff]  ;;  %v563_v30 = vld [vmem:[#allocation8 + $0x8] sm:$0xff] }
 0x271   :  { %591 = vmatpush.msra.mxu2 %v564_v26 }
 0x272   :  { %v453_v48 = vmul.f32 %v452_v45, %v1360_v2  ;;  %v490_v49 = vadd.f32 %v489_v47, %v488_v31 }
 0x273   :  { %592 = vmatpush.msra.mxu2 %v563_v30 }
 0x274   :  { %v491_v3 = vmul.f32 %v490_v49, %v1360_v2  ;;  %v492_v4 = vmul.f32 %v453_v48, %v453_v48 }
 0x275   :  { %593 = vmatpush.msra.mxu2 %v562_v44 }
 0x276   :  { %v493_v6 = vsub.f32 %v491_v3, %v492_v4 }
 0x278   :  { %v494_v8 = vmax.f32 %v493_v6, 0.0 }
 0x27a   :  { %v495_v11 = vadd.f32 1e-05, %v494_v8 }
 0x27c   :  { %955 = vrsqrt.f32 %v495_v11  ;;  %vm502_vm5 = vweird.f32 %v495_v11 }
 0x282   :  { %v956_v19 = vpop.eup %955 }
 0x283   :  { %v497_v20 = vmul.f32 %v956_v19, %v495_v11  ;;  %vm503_vm4 = vweird.f32 %v956_v19 }
 0x284   :  { %vm504_vm6 = vmor %vm502_vm5, %vm503_vm4 }
 0x285   :  { %v498_v22 = vmul.f32 %v956_v19, %v497_v20 }
 0x287   :  { %v499_v25 = vmul.f32 0.5, %v498_v22 }
 0x289   :  { %v500_v28 = vsub.f32 1.5, %v499_v25 }
 0x28b   :  { %v501_v31 = vmul.f32 %v956_v19, %v500_v28 }
 0x28d   :  { %v505_v45 = vsel %vm504_vm6, %v956_v19, %v501_v31 }
 0x28e   :  { %v506_v47 = vmul.f32 %v505_v45, %v1364_v27 }
 0x290   :  { %v507_v46 = vmul.f32 %v506_v47, %v453_v48  ;;  %v512_v49 = vperm.slane %v506_v47, 2 }
 0x292   :  { %v509_v1 = vrot.slane %v507_v46, 7  ;;  %v528_v3 = vmul.f32 %v512_v49, %v1462_v16  ;;  %v513_v6 = vmul.f32 %v512_v49, %v1387_v53  ;;  %v527_v7 = vmul.f32 %v512_v49, %v1450_v50 }
 0x293   :  { %v521_v11 = vmul.f32 %v512_v49, %v1403_v61  ;;  %v522_v12 = vmul.f32 %v512_v49, %v1405_v52  ;;  %v523_v48 = vmul.f32 %v512_v49, %v1407_v62  ;;  %v524_v13 = vmul.f32 %v512_v49, %v1409_v63 }
 0x294   :  { %v511_v4 = vsub.f32 %v1364_v27, %v509_v1  ;;  %v525_v16 = vmul.f32 %v512_v49, %v1422_v9  ;;  %v526_v18 = vmul.f32 %v512_v49, %v1436_v23  ;;  %v514_v61 = vmul.f32 %v512_v49, %v1389_v54 }
 0x295   :  { %v515_v62 = vmul.f32 %v512_v49, %v1391_v55  ;;  %v516_v23 = vmul.f32 %v512_v49, %v1393_v56  ;;  %v517_v26 = vmul.f32 %v512_v49, %v1395_v57  ;;  %v518_v30 = vmul.f32 %v512_v49, %v1397_v58 }
 0x296   :  { %v529_v5 = vperm.slane %v511_v4, 3  ;;  %v519_v44 = vmul.f32 %v512_v49, %v1399_v59  ;;  %v520_v47 = vmul.f32 %v512_v49, %v1401_v60 }
 0x298   :  { %v1474_v8 = vadd.f32 %v529_v5, %v528_v3  ;;  %v530_v10 = vadd.f32 %v529_v5, %v513_v6  ;;  %v538_v15 = vadd.f32 %v529_v5, %v521_v11  ;;  %v539_v17 = vadd.f32 %v529_v5, %v522_v12 }
 0x299   :  { %v540_v53 = vadd.f32 %v529_v5, %v523_v48  ;;  %v541_v50 = vadd.f32 %v529_v5, %v524_v13  ;;  %v542_v19 = vadd.f32 %v529_v5, %v525_v16  ;;  %v543_v20 = vadd.f32 %v529_v5, %v526_v18 }
 0x29a   :  { %957 = vtanh.f32 %v530_v10  ;;  %v544_v21 = vadd.f32 %v529_v5, %v527_v7  ;;  %v531_v22 = vadd.f32 %v529_v5, %v514_v61  ;;  %v532_v63 = vadd.f32 %v529_v5, %v515_v62 }
 0x29b   :  { %v533_v24 = vadd.f32 %v529_v5, %v516_v23  ;;  %v534_v28 = vadd.f32 %v529_v5, %v517_v26  ;;  %v535_v31 = vadd.f32 %v529_v5, %v518_v30  ;;  %v536_v45 = vadd.f32 %v529_v5, %v519_v44 }
 0x29c   :  { %959 = vtanh.f32 %v531_v22  ;;  %v537_v46 = vadd.f32 %v529_v5, %v520_v47 }
 0x29d   :  { %961 = vtanh.f32 %v532_v63 }
 0x29e   :  { %963 = vtanh.f32 %v533_v24 }
 0x29f   :  { %965 = vtanh.f32 %v534_v28 }
 0x2a0   :  { %v958_v52 = vpop.eup %957  ;;  %967 = vtanh.f32 %v535_v31 }
 0x2a1   :  { %594 = vmatmul.f32.vlgmr.msra.gmra.mxu2 %v958_v52  ;;  %969 = vtanh.f32 %v536_v45 }
 0x2a2   :  { %v960_v9 = vpop.eup %959  ;;  %971 = vtanh.f32 %v537_v46 }
 0x2a3   :  { %v962_v25 = vpop.eup %961  ;;  %973 = vtanh.f32 %v538_v15 }
 0x2a4   :  { %v964_v54 = vpop.eup %963  ;;  %975 = vtanh.f32 %v539_v17 }
 0x2a5   :  { %v966_v55 = vpop.eup %965  ;;  %977 = vtanh.f32 %v540_v53 }
 0x2a6   :  { %v968_v56 = vpop.eup %967  ;;  %979 = vtanh.f32 %v541_v50 }
 0x2a7   :  { %v970_v57 = vpop.eup %969  ;;  %981 = vtanh.f32 %v542_v19 }
 0x2a8   :  { %v972_v1 = vpop.eup %971  ;;  %983 = vtanh.f32 %v543_v20 }
 0x2a9   :  { %597 = vmatmul.f32.gmra.mxu2 %v960_v9  ;;  %v974_v58 = vpop.eup %973  ;;  %985 = vtanh.f32 %v544_v21 }
 0x2aa   :  { %v976_v3 = vpop.eup %975  ;;  %987 = vtanh.f32 %v1474_v8 }
 0x2ab   :  { %v978_v59 = vpop.eup %977 }
 0x2ac   :  { %v980_v4 = vpop.eup %979 }
 0x2ad   :  { %v982_v60 = vpop.eup %981 }
 0x2ae   :  { %v984_v49 = vpop.eup %983 }
 0x2af   :  { %v986_v5 = vpop.eup %985 }
 0x2b0   :  { %v988_v6 = vpop.eup %987 }
 0x2b1   :  { %600 = vmatmul.f32.gmra.mxu2 %v962_v25 }
 0x2b9   :  { %603 = vmatmul.f32.gmra.mxu2 %v964_v54 }
 0x2c1   :  { %606 = vmatmul.f32.gmra.mxu2 %v966_v55 }
 0x2c9   :  { %609 = vmatmul.f32.gmra.mxu2 %v968_v56 }
 0x2d1   :  { %612 = vmatmul.f32.gmra.mxu2 %v970_v57 }
 0x2d9   :  { %615 = vmatmul.f32.gmra.mxu2 %v972_v1 }
 0x2e1   :  { %618 = vmatmul.f32.gmra.mxu2 %v974_v58 }
 0x2e9   :  { %621 = vmatmul.f32.gmra.mxu2 %v976_v3 }
 0x2f1   :  { %624 = vmatmul.f32.gmra.mxu2 %v978_v59 }
 0x2f9   :  { %627 = vmatmul.f32.gmra.mxu2 %v980_v4 }
 0x301   :  { %630 = vmatmul.f32.gmra.mxu2 %v982_v60 }
 0x309   :  { %633 = vmatmul.f32.gmra.mxu2 %v984_v49 }
 0x311   :  { %636 = vmatmul.f32.gmra.mxu2 %v986_v5 }
 0x319   :  { %639 = vmatmul.f32.gmra.mxu2 %v988_v6 }
 0x324   :  { %v595_v7 = vpop.f32.mrf.mxu2 }
 0x325   :  { %v596_v19 = vadd.f32 %v595_v7, %v1280_v32 }
 0x327   :  { %v1496_v22 = vmul.f32 0.5, %v596_v19 }
 0x32c   :  { %v598_v10 = vpop.f32.mrf.mxu2 }
 0x32d   :  { %v599_v50 = vadd.f32 %v598_v10, %v1282_v33  ;;  %v681_v33 = vmul.f32 %v1496_v22, %v1496_v22 }
 0x32f   :  { %v1493_v21 = vmul.f32 0.5, %v599_v50 }
 0x331   :  { %v682_v63 = vmul.f32 %v1493_v21, %v1493_v21 }
 0x333   :  { %v697_v25 = vadd.f32 %v682_v63, %v681_v33 }
 0x334   :  { %v601_v11 = vpop.f32.mrf.mxu2 }
 0x335   :  { %v602_v20 = vadd.f32 %v601_v11, %v1284_v34 }
 0x337   :  { %v1498_v52 = vmul.f32 0.5, %v602_v20 }
 0x339   :  { %v683_v34 = vmul.f32 %v1498_v52, %v1498_v52 }
 0x33b   :  { %v698_v30 = vadd.f32 %v697_v25, %v683_v34 }
 0x33c   :  { %v604_v12 = vpop.f32.mrf.mxu2 }
 0x33d   :  { %v605_v61 = vadd.f32 %v604_v12, %v1286_v35 }
 0x33f   :  { %v1503_v9 = vmul.f32 0.5, %v605_v61 }
 0x341   :  { %v684_v26 = vmul.f32 %v1503_v9, %v1503_v9 }
 0x343   :  { %v699_v45 = vadd.f32 %v698_v30, %v684_v26 }
 0x344   :  { %v607_v48 = vpop.f32.mrf.mxu2 }
 0x345   :  { %v608_v62 = vadd.f32 %v607_v48, %v1288_v36  ;;  %v659_v36 = vadd.f32 %v1493_v21, %v1496_v22 }
 0x347   :  { %v1510_v35 = vmul.f32 0.5, %v608_v62  ;;  %v660_v54 = vadd.f32 %v659_v36, %v1498_v52 }
 0x349   :  { %v685_v31 = vmul.f32 %v1510_v35, %v1510_v35  ;;  %v661_v44 = vadd.f32 %v660_v54, %v1503_v9 }
 0x34b   :  { %v700_v57 = vadd.f32 %v699_v45, %v685_v31 }
 0x34c   :  { %v610_v13 = vpop.f32.mrf.mxu2 }
 0x34d   :  { %v611_v32 = vadd.f32 %v610_v13, %v1290_v37 }
 0x34f   :  { %v1517_v28 = vmul.f32 0.5, %v611_v32 }
 0x351   :  { %v686_v56 = vmul.f32 %v1517_v28, %v1517_v28 }
 0x353   :  { %v701_v4 = vadd.f32 %v700_v57, %v686_v56 }
 0x354   :  { %v613_v16 = vpop.f32.mrf.mxu2 }
 0x355   :  { %v614_v23 = vadd.f32 %v613_v16, %v1292_v38 }
 0x357   :  { %v1523_v55 = vmul.f32 0.5, %v614_v23 }
 0x359   :  { %v687_v1 = vmul.f32 %v1523_v55, %v1523_v55 }
 0x35b   :  { %v702_v6 = vadd.f32 %v701_v4, %v687_v1  ;;  %v804_v4 = vld [vmem:[#allocation10 + $0x78] sm:$0xff] }
 0x35c   :  { %v616_v15 = vpop.f32.mrf.mxu2  ;;  %806 = vmatpush.msra.mxu3 %v804_v4 }
 0x35d   :  { %v617_v37 = vadd.f32 %v616_v15, %v1294_v39  ;;  %v662_v39 = vadd.f32 %v661_v44, %v1510_v35 }
 0x35f   :  { %v1529_v47 = vmul.f32 0.5, %v617_v37 }
 0x361   :  { %v688_v60 = vmul.f32 %v1529_v47, %v1529_v47 }
 0x363   :  { %v703_v12 = vadd.f32 %v702_v6, %v688_v60 }
 0x364   :  { %v619_v17 = vpop.f32.mrf.mxu2 }
 0x365   :  { %v620_v38 = vadd.f32 %v619_v17, %v1296_v40  ;;  %v663_v40 = vadd.f32 %v662_v39, %v1517_v28 }
 0x367   :  { %v1535_v58 = vmul.f32 0.5, %v620_v38  ;;  %v664_v49 = vadd.f32 %v663_v40, %v1523_v55 }
 0x369   :  { %v689_v7 = vmul.f32 %v1535_v58, %v1535_v58  ;;  %v665_v10 = vadd.f32 %v664_v49, %v1529_v47 }
 0x36b   :  { %v666_v48 = vadd.f32 %v665_v10, %v1535_v58  ;;  %v704_v15 = vadd.f32 %v703_v12, %v689_v7  ;;  %v802_v10 = vld [vmem:[#allocation10 + $0x68] sm:$0xff] }
 0x36c   :  { %v622_v18 = vpop.f32.mrf.mxu2 }
 0x36d   :  { %v623_v46 = vadd.f32 %v622_v18, %v1298_v41 }
 0x36f   :  { %v1542_v5 = vmul.f32 0.5, %v623_v46 }
 0x371   :  { %v690_v13 = vmul.f32 %v1542_v5, %v1542_v5  ;;  %v667_v18 = vadd.f32 %v666_v48, %v1542_v5  ;;  %v801_v48 = vld [vmem:[#allocation10 + $0x60] sm:$0xff] }
 0x373   :  { %v705_v19 = vadd.f32 %v704_v15, %v690_v13  ;;  %v799_v15 = vld [vmem:[#allocation10 + $0x50] sm:$0xff] }
 0x374   :  { %v625_v53 = vpop.f32.mrf.mxu2 }
 0x375   :  { %v626_v59 = vadd.f32 %v625_v53, %v1300_v42 }
 0x377   :  { %v1548_v11 = vmul.f32 0.5, %v626_v59 }
 0x379   :  { %v691_v53 = vmul.f32 %v1548_v11, %v1548_v11  ;;  %v668_v20 = vadd.f32 %v667_v18, %v1548_v11  ;;  %v798_v18 = vld [vmem:[#allocation10 + $0x48] sm:$0xff] }
 0x37c   :  { %v628_v8 = vpop.f32.mrf.mxu2 }
 0x37d   :  { %v629_v41 = vadd.f32 %v628_v8, %v1302_v43 }
 0x37f   :  { %v1554_v16 = vmul.f32 0.5, %v629_v41  ;;  %v803_v41 = vld [vmem:[#allocation10 + $0x70] sm:$0xff] }
 0x380   :  { %807 = vmatpush.msra.mxu3 %v803_v41 }
 0x381   :  { %v692_v8 = vmul.f32 %v1554_v16, %v1554_v16  ;;  %v669_v62 = vadd.f32 %v668_v20, %v1554_v16  ;;  %v795_v20 = vld [vmem:[#allocation10 + $0x30] sm:$0xff] }
 0x382   :  { %808 = vmatpush.msra.mxu3 %v802_v10 }
 0x384   :  { %v631_v24 = vpop.f32.mrf.mxu2  ;;  %809 = vmatpush.msra.mxu3 %v801_v48 }
 0x385   :  { %v632_v42 = vadd.f32 %v631_v24, %v1315_v51 }
 0x387   :  { %v1560_v50 = vmul.f32 0.5, %v632_v42 }
 0x389   :  { %v693_v63 = vmul.f32 %v1560_v50, %v1560_v50  ;;  %v670_v34 = vadd.f32 %v669_v62, %v1560_v50  ;;  %v793_v62 = vld [vmem:[#allocation10 + $0x20] sm:$0xff] }
 0x38c   :  { %v634_v3 = vpop.f32.mrf.mxu2 }
 0x38d   :  { %v635_v43 = vadd.f32 %v634_v3, %v1329_v0  ;;  %v706_v0 = vadd.f32 %v705_v19, %v691_v53  ;;  %v796_v19 = vld [vmem:[#allocation10 + $0x38] sm:$0xff] }
 0x38f   :  { %v1566_v61 = vmul.f32 0.5, %v635_v43  ;;  %v707_v33 = vadd.f32 %v706_v0, %v692_v8  ;;  %v800_v43 = vld [vmem:[#allocation10 + $0x58] sm:$0xff] }
 0x390   :  { %810 = vmatpush.msra.mxu3 %v800_v43 }
 0x391   :  { %v708_v24 = vadd.f32 %v707_v33, %v693_v63  ;;  %v671_v36 = vadd.f32 %v670_v34, %v1566_v61  ;;  %v792_v33 = vld [vmem:[#allocation10 + $0x18] sm:$0xff] }
 0x392   :  { %811 = vmatpush.msra.mxu3 %v799_v15 }
 0x394   :  { %v637_v17 = vpop.f32.mrf.mxu2  ;;  %812 = vmatpush.msra.mxu3 %v798_v18 }
 0x395   :  { %v638_v51 = vadd.f32 %v637_v17, %v1343_v14  ;;  %v694_v14 = vmul.f32 %v1566_v61, %v1566_v61 }
 0x397   :  { %v1571_v32 = vmul.f32 0.5, %v638_v51  ;;  %v709_v37 = vadd.f32 %v708_v24, %v694_v14  ;;  %v797_v51 = vld [vmem:[#allocation10 + $0x40] sm:$0xff]  ;;  %v791_v14 = vld [vmem:[#allocation10 + $0x10] sm:$0xff]  ;;  %v790_v24 = vld [vmem:[#allocation10 + $0x8] sm:$0xff] }
 0x398   :  { %813 = vmatpush.msra.mxu3 %v797_v51 }
 0x399   :  { %v695_v25 = vmul.f32 %v1571_v32, %v1571_v32  ;;  %v672_v54 = vadd.f32 %v671_v36, %v1571_v32 }
 0x39a   :  { %814 = vmatpush.msra.mxu3 %v796_v19 }
 0x39b   :  { %v710_v31 = vadd.f32 %v709_v37, %v695_v25  ;;  %v789_v25 = vld [vmem:[#allocation10] sm:$0xff] }
 0x39c   :  { %v640_v23 = vpop.f32.mrf.mxu2  ;;  %815 = vmatpush.msra.mxu3 %v795_v20 }
 0x39d   :  { %v641_v26 = vadd.f32 %v640_v23, %v1355_v29 }
 0x39f   :  { %v1581_v30 = vmul.f32 0.5, %v641_v26 }
 0x3a1   :  { %v673_v38 = vadd.f32 %v672_v54, %v1581_v30  ;;  %v696_v44 = vmul.f32 %v1581_v30, %v1581_v30 }
 0x3a3   :  { %v674_v45 = vrot.slane %v673_v38, 4  ;;  %v711_v56 = vadd.f32 %v710_v31, %v696_v44 }
 0x3a5   :  { %v675_v39 = vadd.f32 %v674_v45, %v673_v38  ;;  %v712_v46 = vrot.slane %v711_v56, 4 }
 0x3a7   :  { %v676_v57 = vrot.slane %v675_v39, 2  ;;  %v713_v1 = vadd.f32 %v712_v46, %v711_v56 }
 0x3a9   :  { %v677_v3 = vadd.f32 %v676_v57, %v675_v39  ;;  %v714_v40 = vrot.slane %v713_v1, 2 }
 0x3ab   :  { %v678_v29 = vrot.slane %v677_v3, 1  ;;  %v715_v59 = vadd.f32 %v714_v40, %v713_v1 }
 0x3ad   :  { %v679_v60 = vadd.f32 %v678_v29, %v677_v3  ;;  %v716_v49 = vrot.slane %v715_v59, 1 }
 0x3af   :  { %v680_v6 = vmul.f32 %v679_v60, %v1360_v2  ;;  %v717_v7 = vadd.f32 %v716_v49, %v715_v59 }
 0x3b1   :  { %v718_v42 = vmul.f32 %v717_v7, %v1360_v2  ;;  %v719_v12 = vmul.f32 %v680_v6, %v680_v6  ;;  %v794_v2 = vld [vmem:[#allocation10 + $0x28] sm:$0xff] }
 0x3b2   :  { %816 = vmatpush.msra.mxu3 %v794_v2 }
 0x3b3   :  { %v720_v13 = vsub.f32 %v718_v42, %v719_v12 }
 0x3b4   :  { %817 = vmatpush.msra.mxu3 %v793_v62  ;;  %v1023_v62 = vld [vmem:[#allocation11] sm:$0xff] }
 0x3b5   :  { %v721_v17 = vmax.f32 %v720_v13, 0.0 }
 0x3b6   :  { %818 = vmatpush.msra.mxu3 %v792_v33 }
 0x3b7   :  { %v722_v53 = vadd.f32 1e-05, %v721_v17 }
 0x3b8   :  { %819 = vmatpush.msra.mxu3 %v791_v14 }
 0x3b9   :  { %989 = vrsqrt.f32 %v722_v53  ;;  %vm729_vm8 = vweird.f32 %v722_v53 }
 0x3ba   :  { %820 = vmatpush.msra.mxu3 %v790_v24 }
 0x3bc   :  { %821 = vmatpush.msra.mxu3 %v789_v25 }
 0x3bf   :  { %v990_v8 = vpop.eup %989 }
 0x3c0   :  { %v724_v0 = vmul.f32 %v990_v8, %v722_v53  ;;  %vm730_vm7 = vweird.f32 %v990_v8 }
 0x3c1   :  { %vm731_vm9 = vmor %vm729_vm8, %vm730_vm7 }
 0x3c2   :  { %v725_v63 = vmul.f32 %v990_v8, %v724_v0 }
 0x3c4   :  { %v726_v34 = vmul.f32 0.5, %v725_v63  ;;  %v805_v63 = vperm.slane %v1023_v62, 6 }
 0x3c6   :  { %v727_v23 = vsub.f32 1.5, %v726_v34 }
 0x3c8   :  { %v728_v36 = vmul.f32 %v990_v8, %v727_v23 }
 0x3ca   :  { %v732_v26 = vsel %vm731_vm9, %v990_v8, %v728_v36 }
 0x3cb   :  { %v733_v37 = vmul.f32 %v732_v26, %v1364_v27 }
 0x3cd   :  { %v734_v54 = vmul.f32 %v733_v37, %v680_v6  ;;  %v739_v31 = vperm.slane %v733_v37, 4 }
 0x3cf   :  { %v736_v38 = vrot.slane %v734_v54, 7  ;;  %v755_v44 = vmul.f32 %v739_v31, %v1581_v30  ;;  %v740_v39 = vmul.f32 %v739_v31, %v1496_v22  ;;  %v754_v46 = vmul.f32 %v739_v31, %v1571_v32 }
 0x3d0   :  { %v748_v1 = vmul.f32 %v739_v31, %v1535_v58  ;;  %v749_v3 = vmul.f32 %v739_v31, %v1542_v5  ;;  %v750_v40 = vmul.f32 %v739_v31, %v1548_v11  ;;  %v751_v29 = vmul.f32 %v739_v31, %v1554_v16 }
 0x3d1   :  { %v738_v45 = vsub.f32 %v1364_v27, %v736_v38  ;;  %v752_v59 = vmul.f32 %v739_v31, %v1560_v50  ;;  %v753_v30 = vmul.f32 %v739_v31, %v1566_v61  ;;  %v741_v41 = vmul.f32 %v739_v31, %v1493_v21 }
 0x3d2   :  { %v742_v11 = vmul.f32 %v739_v31, %v1498_v52  ;;  %v743_v61 = vmul.f32 %v739_v31, %v1503_v9  ;;  %v744_v21 = vmul.f32 %v739_v31, %v1510_v35  ;;  %v745_v13 = vmul.f32 %v739_v31, %v1517_v28 }
 0x3d3   :  { %v756_v56 = vperm.slane %v738_v45, 5  ;;  %v746_v15 = vmul.f32 %v739_v31, %v1523_v55  ;;  %v747_v18 = vmul.f32 %v739_v31, %v1529_v47 }
 0x3d5   :  { %v757_v57 = vadd.f32 %v756_v56, %v740_v39  ;;  %v765_v27 = vadd.f32 %v756_v56, %v748_v1  ;;  %v766_v4 = vadd.f32 %v756_v56, %v749_v3  ;;  %v767_v60 = vadd.f32 %v756_v56, %v750_v40 }
 0x3d6   :  { %v768_v22 = vadd.f32 %v756_v56, %v751_v29  ;;  %v769_v49 = vadd.f32 %v756_v56, %v752_v59  ;;  %v770_v32 = vadd.f32 %v756_v56, %v753_v30  ;;  %v771_v58 = vadd.f32 %v756_v56, %v754_v46 }
 0x3d7   :  { %991 = vtanh.f32 %v757_v57  ;;  %v772_v6 = vadd.f32 %v756_v56, %v755_v44  ;;  %v758_v5 = vadd.f32 %v756_v56, %v741_v41  ;;  %v759_v16 = vadd.f32 %v756_v56, %v742_v11 }
 0x3d8   :  { %v760_v10 = vadd.f32 %v756_v56, %v743_v61  ;;  %v761_v12 = vadd.f32 %v756_v56, %v744_v21  ;;  %v762_v43 = vadd.f32 %v756_v56, %v745_v13  ;;  %v763_v17 = vadd.f32 %v756_v56, %v746_v15 }
 0x3d9   :  { %993 = vtanh.f32 %v758_v5  ;;  %v764_v53 = vadd.f32 %v756_v56, %v747_v18 }
 0x3da   :  { %995 = vtanh.f32 %v759_v16 }
 0x3db   :  { %997 = vtanh.f32 %v760_v10 }
 0x3dc   :  { %999 = vtanh.f32 %v761_v12 }
 0x3dd   :  { %v992_v7 = vpop.eup %991  ;;  %1001 = vtanh.f32 %v762_v43 }
 0x3de   :  { %822 = vmatmul.f32.vlgmr.msra.gmra.mxu3 %v992_v7  ;;  %1003 = vtanh.f32 %v763_v17 }
 0x3df   :  { %v994_v50 = vpop.eup %993  ;;  %1005 = vtanh.f32 %v764_v53 }
 0x3e0   :  { %v996_v42 = vpop.eup %995  ;;  %1007 = vtanh.f32 %v765_v27 }
 0x3e1   :  { %v998_v48 = vpop.eup %997  ;;  %1009 = vtanh.f32 %v766_v4 }
 0x3e2   :  { %v1000_v52 = vpop.eup %999  ;;  %1011 = vtanh.f32 %v767_v60 }
 0x3e3   :  { %v1002_v9 = vpop.eup %1001  ;;  %1013 = vtanh.f32 %v768_v22 }
 0x3e4   :  { %v1004_v35 = vpop.eup %1003  ;;  %1015 = vtanh.f32 %v769_v49 }
 0x3e5   :  { %v1006_v51 = vpop.eup %1005  ;;  %1017 = vtanh.f32 %v770_v32 }
 0x3e6   :  { %825 = vmatmul.f32.gmra.mxu3 %v994_v50  ;;  %v1008_v28 = vpop.eup %1007  ;;  %1019 = vtanh.f32 %v771_v58 }
 0x3e7   :  { %v1010_v19 = vpop.eup %1009  ;;  %1021 = vtanh.f32 %v772_v6 }
 0x3e8   :  { %v1012_v55 = vpop.eup %1011 }
 0x3e9   :  { %v1014_v20 = vpop.eup %1013 }
 0x3ea   :  { %v1016_v47 = vpop.eup %1015 }
 0x3eb   :  { %v1018_v2 = vpop.eup %1017 }
 0x3ec   :  { %v1020_v8 = vpop.eup %1019 }
 0x3ed   :  { %v1022_v0 = vpop.eup %1021 }
 0x3ee   :  { %828 = vmatmul.f32.gmra.mxu3 %v996_v42 }
 0x3f6   :  { %831 = vmatmul.f32.gmra.mxu3 %v998_v48 }
 0x3fe   :  { %834 = vmatmul.f32.gmra.mxu3 %v1000_v52 }
 0x406   :  { %837 = vmatmul.f32.gmra.mxu3 %v1002_v9 }
 0x40e   :  { %840 = vmatmul.f32.gmra.mxu3 %v1004_v35 }
 0x416   :  { %843 = vmatmul.f32.gmra.mxu3 %v1006_v51 }
 0x41e   :  { %846 = vmatmul.f32.gmra.mxu3 %v1008_v28 }
 0x426   :  { %849 = vmatmul.f32.gmra.mxu3 %v1010_v19 }
 0x42e   :  { %852 = vmatmul.f32.gmra.mxu3 %v1012_v55 }
 0x436   :  { %855 = vmatmul.f32.gmra.mxu3 %v1014_v20 }
 0x43e   :  { %858 = vmatmul.f32.gmra.mxu3 %v1016_v47 }
 0x446   :  { %861 = vmatmul.f32.gmra.mxu3 %v1018_v2 }
 0x44e   :  { %864 = vmatmul.f32.gmra.mxu3 %v1020_v8 }
 0x456   :  { %867 = vmatmul.f32.gmra.mxu3 %v1022_v0 }
 0x461   :  { %v823_v33 = vpop.f32.mrf.mxu3 }
 0x462   :  { %v824_v34 = vadd.f32 %v823_v33, %v805_v63 }
 0x464   :  { %871 = vst [vmem:[#allocation13] sm:$0xff] %v824_v34 }
 0x469   :  { %v826_v14 = vpop.f32.mrf.mxu3 }
 0x46a   :  { %v827_v23 = vadd.f32 %v826_v14, %v805_v63 }
 0x46c   :  { %872 = vst [vmem:[#allocation13 + $0x8] sm:$0xff] %v827_v23 }
 0x471   :  { %v829_v24 = vpop.f32.mrf.mxu3 }
 0x472   :  { %v830_v36 = vadd.f32 %v829_v24, %v805_v63 }
 0x474   :  { %873 = vst [vmem:[#allocation13 + $0x10] sm:$0xff] %v830_v36 }
 0x479   :  { %v832_v25 = vpop.f32.mrf.mxu3 }
 0x47a   :  { %v833_v26 = vadd.f32 %v832_v25, %v805_v63 }
 0x47c   :  { %874 = vst [vmem:[#allocation13 + $0x18] sm:$0xff] %v833_v26 }
 0x481   :  { %v835_v37 = vpop.f32.mrf.mxu3 }
 0x482   :  { %v836_v54 = vadd.f32 %v835_v37, %v805_v63 }
 0x484   :  { %875 = vst [vmem:[#allocation13 + $0x20] sm:$0xff] %v836_v54 }
 0x489   :  { %v838_v31 = vpop.f32.mrf.mxu3 }
 0x48a   :  { %v839_v38 = vadd.f32 %v838_v31, %v805_v63 }
 0x48c   :  { %876 = vst [vmem:[#allocation13 + $0x28] sm:$0xff] %v839_v38 }
 0x491   :  { %v841_v44 = vpop.f32.mrf.mxu3 }
 0x492   :  { %v842_v45 = vadd.f32 %v841_v44, %v805_v63 }
 0x494   :  { %877 = vst [vmem:[#allocation13 + $0x30] sm:$0xff] %v842_v45 }
 0x499   :  { %v844_v56 = vpop.f32.mrf.mxu3 }
 0x49a   :  { %v845_v39 = vadd.f32 %v844_v56, %v805_v63 }
 0x49c   :  { %878 = vst [vmem:[#allocation13 + $0x38] sm:$0xff] %v845_v39 }
 0x4a1   :  { %v847_v46 = vpop.f32.mrf.mxu3 }
 0x4a2   :  { %v848_v57 = vadd.f32 %v847_v46, %v805_v63 }
 0x4a4   :  { %879 = vst [vmem:[#allocation13 + $0x40] sm:$0xff] %v848_v57 }
 0x4a9   :  { %v850_v1 = vpop.f32.mrf.mxu3 }
 0x4aa   :  { %v851_v3 = vadd.f32 %v850_v1, %v805_v63 }
 0x4ac   :  { %880 = vst [vmem:[#allocation13 + $0x48] sm:$0xff] %v851_v3 }
 0x4b1   :  { %v853_v40 = vpop.f32.mrf.mxu3 }
 0x4b2   :  { %v854_v29 = vadd.f32 %v853_v40, %v805_v63 }
 0x4b4   :  { %881 = vst [vmem:[#allocation13 + $0x50] sm:$0xff] %v854_v29 }
 0x4b9   :  { %v856_v59 = vpop.f32.mrf.mxu3 }
 0x4ba   :  { %v857_v30 = vadd.f32 %v856_v59, %v805_v63 }
 0x4bc   :  { %882 = vst [vmem:[#allocation13 + $0x58] sm:$0xff] %v857_v30 }
 0x4c1   :  { %v859_v27 = vpop.f32.mrf.mxu3 }
 0x4c2   :  { %v860_v4 = vadd.f32 %v859_v27, %v805_v63 }
 0x4c4   :  { %883 = vst [vmem:[#allocation13 + $0x60] sm:$0xff] %v860_v4 }
 0x4c9   :  { %v862_v60 = vpop.f32.mrf.mxu3 }
 0x4ca   :  { %v863_v22 = vadd.f32 %v862_v60, %v805_v63 }
 0x4cc   :  { %884 = vst [vmem:[#allocation13 + $0x68] sm:$0xff] %v863_v22 }
 0x4d1   :  { %v865_v49 = vpop.f32.mrf.mxu3 }
 0x4d2   :  { %v866_v32 = vadd.f32 %v865_v49, %v805_v63 }
 0x4d4   :  { %885 = vst [vmem:[#allocation13 + $0x70] sm:$0xff] %v866_v32 }
 0x4d9   :  { %v868_v41 = vpop.f32.mrf.mxu3 }
 0x4da   :  { %v869_v58 = vadd.f32 %v868_v41, %v805_v63 }
 0x4dc   :  { %886 = vst [vmem:[#allocation13 + $0x78] sm:$0xff] %v869_v58 }
 0x4dd   :  { %899 = dma.vmem_to_hbm [thread:$0]  %s892_s24, 2048, %s894_s27, [#allocation4], %s1203_s29, %s1203_s29, %s1204_s30  }
 0x4de   :  { %1200 = dma.done.wait [#allocation4], 2048  }
 0x4df   :  { %1201 = vsyncadd [#allocation4], 4294965248 }
 0x4e0   :  { %904 = vsyncpa [#allocation3], 1 }
 0x4e1   :  { %905 = vsyncpa [#allocation6], 1 }
 0x4e2   :  { %906 = vsyncpa [#allocation9], 1 }
 0x4e3   :  { %907 = vsyncpa [#allocation12], 1 }
 0x4e4   :  { %908 = vsyncpa [#allocation4], 1 }

</bundles_post_ra>
